<compile_context>
chip_gen: v5e
topology: v5e:2x2
jax: 0.10.0
libtpu: 0.0.40
codegen_flags: <defaults>
</compile_context>

<pallas_src>
import jax
import jax.numpy as jnp
from jax import lax
from jax.experimental import pallas as pl
from jax.experimental.pallas import tpu as pltpu


# ---------------------------------------------------------------------------
# Kernels
# ---------------------------------------------------------------------------

def _tiled_kernel(zi_ref, zj_ref, adj_ref):
    # zi_ref:  (1, TM, D)  rows of z for this output row-tile
    # zj_ref:  (1, TN, D)  rows of z for this output col-tile
    # adj_ref: (1, TM, TN)
    zi = zi_ref[0]
    zj = zj_ref[0]
    # Contract on D of both operands -> MXU gets the natural layout,
    # no explicit transpose of z is materialized.
    scores = lax.dot_general(
        zi, zj,
        dimension_numbers=(((1,), (1,)), ((), ())),
        preferred_element_type=jnp.float32,
    )
    adj_ref[0] = jax.nn.sigmoid(scores).astype(adj_ref.dtype)


def _batched_small_kernel(z_ref, adj_ref):
    # z_ref:   (BB, N, D)  -- several batch elements per grid step
    # adj_ref: (BB, N, N)
    z = z_ref[...]
    scores = jnp.einsum(
        "bnd,bmd->bnm", z, z, preferred_element_type=jnp.float32
    )
    adj_ref[...] = jax.nn.sigmoid(scores).astype(adj_ref.dtype)


# ---------------------------------------------------------------------------
# Helpers
# ---------------------------------------------------------------------------

def _pick_tile(n, candidates):
    """Largest candidate tile that divides n; otherwise full extent n."""
    for c in candidates:
        if c <= n and n % c == 0:
            return c
    return n


def _largest_divisor_le(n, cap):
    cap = max(1, min(n, cap))
    for d in range(cap, 0, -1):
        if n % d == 0:
            return d
    return 1


# ---------------------------------------------------------------------------
# Wrapper
# ---------------------------------------------------------------------------

def batch_inner_product_decoder(z):
    """adj = sigmoid(z @ z^T) per batch element, computed in a Pallas TPU kernel."""
    B, N, D = z.shape
    out_dtype = z.dtype
    out_shape = jax.ShapeDtypeStruct((B, N, N), out_dtype)

    in_bytes = jnp.dtype(z.dtype).itemsize
    out_bytes = jnp.dtype(out_dtype).itemsize
    cost = pl.CostEstimate(
        flops=2 * B * N * N * D,
        transcendentals=B * N * N,
        bytes_accessed=B * N * D * in_bytes + B * N * N * out_bytes,
    )

    # --- Small-N path: pack multiple batch elements per grid step ----------
    if N <= 128:
        # Cap the per-step output block at ~4 MiB so double-buffering stays
        # well under the scoped VMEM limit on all generations.
        max_bb = max(1, (4 << 20) // max(1, N * N * out_bytes))
        bb = _largest_divisor_le(B, max_bb)
        return pl.pallas_call(
            _batched_small_kernel,
            out_shape=out_shape,
            grid_spec=pltpu.PrefetchScalarGridSpec(
                num_scalar_prefetch=0,
                grid=(B // bb,),
                in_specs=[pl.BlockSpec((bb, N, D), lambda b: (b, 0, 0))],
                out_specs=pl.BlockSpec((bb, N, N), lambda b: (b, 0, 0)),
            ),
            compiler_params=pltpu.CompilerParams(
                dimension_semantics=("parallel",),
                vmem_limit_bytes=48 << 20,
            ),
            cost_estimate=cost,
        )(z)

    # --- Large-N path: tile the (N, N) output over (i, j) ------------------
    # TM multiple of 8 (sublane), TN multiple of 128 (lane-dense unmasked
    # stores); fall back to full extent if N has no such divisor.
    tm = _pick_tile(N, (512, 256, 128, 64, 32, 16, 8))
    tn = _pick_tile(N, (1024, 512, 256, 128))
    grid = (B, N // tm, N // tn)  # j innermost -> row tile reused across j

    return pl.pallas_call(
        _tiled_kernel,
        out_shape=out_shape,
        grid_spec=pltpu.PrefetchScalarGridSpec(
            num_scalar_prefetch=0,
            grid=grid,
            in_specs=[
                pl.BlockSpec((1, tm, D), lambda b, i, j: (b, i, 0)),
                pl.BlockSpec((1, tn, D), lambda b, i, j: (b, j, 0)),
            ],
            out_specs=pl.BlockSpec((1, tm, tn), lambda b, i, j: (b, i, j)),
        ),
        compiler_params=pltpu.CompilerParams(
            dimension_semantics=("parallel", "parallel", "parallel"),
            vmem_limit_bytes=48 << 20,
        ),
        cost_estimate=cost,
    )(z, z)


# ---------------------------------------------------------------------------
# Self-test
# ---------------------------------------------------------------------------

if __name__ == "__main__":
    k1, k2 = jax.random.split(jax.random.PRNGKey(0))

    # Small shape (exercises the batched small-N path), matching the module's
    # typical (batch, nodes, latent) usage.
    B, N, D = 2, 16, 32
    z_small = jax.random.normal(k1, (B, N, D), dtype=jnp.float32)
    adj_small = jax.block_until_ready(batch_inner_product_decoder(z_small))
    ref_small = jax.nn.sigmoid(jnp.einsum("bnd,bmd->bnm", z_small, z_small))
    assert adj_small.shape == (B, N, N)
    assert jnp.allclose(adj_small, ref_small, atol=2e-5, rtol=2e-5)

    # Larger node count (exercises the tiled (i, j) output path).
    B2, N2, D2 = 2, 256, 32
    z_big = jax.random.normal(k2, (B2, N2, D2), dtype=jnp.float32)
    adj_big = jax.block_until_ready(batch_inner_product_decoder(z_big))
    ref_big = jax.nn.sigmoid(jnp.einsum("bnd,bmd->bnm", z_big, z_big))
    assert adj_big.shape == (B2, N2, N2)
    assert jnp.allclose(adj_big, ref_big, atol=2e-5, rtol=2e-5)

    print("KERNEL_OK")
</pallas_src>

<mosaic_0001>
module attributes {stable_mosaic.version = 11 : i64} {
  func.func @_batched_small_kernel(%arg0: i32, %arg1: memref<2x16x32xf32, #tpu.memory_space<vmem>>, %arg2: memref<2x16x16xf32, #tpu.memory_space<vmem>>) attributes {dimension_semantics = [#tpu.dimension_semantics<parallel>], iteration_bounds = array<i64: 1>, scalar_prefetch = 0 : i64, scratch_operands = 0 : i64, tpu.core_type = #tpu.core_type<tc>, window_params = [{transform_indices = @transform_0, window_bounds = array<i64: 2, 16, 32>}, {transform_indices = @transform_1, window_bounds = array<i64: 2, 16, 16>}]} {
    %c0 = arith.constant 0 : index
    %c0_0 = arith.constant 0 : index
    %c0_1 = arith.constant 0 : index
    %0 = vector.load %arg1[%c0, %c0_0, %c0_1] : memref<2x16x32xf32, #tpu.memory_space<vmem>>, vector<2x16x32xf32>
    "tpu.trace_start"() <{level = 10 : i32, message = "bnd,bmd->bnm"}> : () -> ()
    %cst = arith.constant dense<0.000000e+00> : vector<2x16x16xf32>
    %1 = tpu.matmul %0, %0, %cst {dimension_numbers = #tpu.dot_dimension_numbers<[2], [2], [1], [1], [0, 0, 0, 1, 1, 1], [0], [0]>} : vector<2x16x32xf32>, vector<2x16x32xf32>, vector<2x16x16xf32> -> vector<2x16x16xf32>
    "tpu.trace_stop"() : () -> ()
    %2 = arith.negf %1 : vector<2x16x16xf32>
    %3 = math.exp %2 : vector<2x16x16xf32>
    %cst_2 = arith.constant 1.000000e+00 : f32
    %4 = vector.broadcast %cst_2 : f32 to vector<2x16x16xf32>
    %5 = arith.addf %4, %3 : vector<2x16x16xf32>
    %6 = arith.divf %4, %5 : vector<2x16x16xf32>
    %c0_3 = arith.constant 0 : index
    %c0_4 = arith.constant 0 : index
    %c0_5 = arith.constant 0 : index
    %7 = vector.load %arg2[%c0_3, %c0_4, %c0_5] : memref<2x16x16xf32, #tpu.memory_space<vmem>>, vector<2x16x16xf32>
    tpu.vector_store %arg2[%c0_3, %c0_4, %c0_5], %6 {strides = array<i32>} : memref<2x16x16xf32, #tpu.memory_space<vmem>>, vector<2x16x16xf32>,
    return
  }
  func.func @transform_0(%arg0: i32) -> (i32, i32, i32) {
    %c0_i32 = arith.constant 0 : i32
    %c0_i32_0 = arith.constant 0 : i32
    %c0_i32_1 = arith.constant 0 : i32
    return %arg0, %c0_i32, %c0_i32_0 : i32, i32, i32
  }
  func.func @transform_1(%arg0: i32) -> (i32, i32, i32) {
    %c0_i32 = arith.constant 0 : i32
    %c0_i32_0 = arith.constant 0 : i32
    %c0_i32_1 = arith.constant 0 : i32
    return %arg0, %c0_i32, %c0_i32_0 : i32, i32, i32
  }
}

</mosaic_0001>

<bundles_post_ra>
// kernel: tpu_custom_call.1
= control target key start
LH: loop header
LB: loop body
LE: loop exit
PB: predicated region body
PF: predicated region fallthrough
CT: control target
= control target key end

     0   :  { %6 = vsyncpa [#allocation3], 0  ;;  %s318_s0 = inlined_call_operand.hbm [shape: f32[2,16,32], index: 0, kind: input, shape index: {}]   ;;  %s319_s1 = inlined_call_operand.hbm [shape: f32[2,16,16], index: 1, kind: output, shape index: {}]  }
   0x1   :  { %7 = vsyncpa [#allocation4], 0  ;;  %s12_s8 = sshll.u32 %s318_s0, 4  ;;  %s276_s9 = smov [#allocation2]   ;;  %s13_s8 = int_to_ptr.hbm [resolvable:$true] %s12_s8 }
   0x2   :  { %s14_s10 = sshll.u32 %s276_s9, 4  ;;  %s277_s11 = smov 128   ;;  %s15_s10 = int_to_ptr.vmem [resolvable:$true] %s14_s10 }
   0x3   :  { %s278_s12 = smov 8  }
   0x4   :  { %20 = dma.hbm_to_vmem [thread:$0]  %s13_s8, 512, %s15_s10, [#allocation3], %s277_s11, %s277_s11, %s278_s12  }
   0x5   :  { %272 = dma.done.wait [#allocation3], 512  }
   0x6   :  { %273 = vsyncadd [#allocation3], 4294966784  ;;  %vm29_vm0 = vcmask 261120   ;;  %v26_v0 = vld [vmem:[#allocation2 + $0x8] sm:$0xff]  ;;  %v28_v1 = vld [vmem:[#allocation2 + $0x18] sm:$0xff]  ;;  %vm164_vm6 = vcmask 130048  }
   0x7   :  { %188 = vmatpush.xpose.msk.msra.mxu0 %vm29_vm0, %v26_v0  ;;  %200 = vmatpush.xpose.msk.msra.mxu2 %vm29_vm0, %v26_v0  ;;  %v25_v2 = vld [vmem:[#allocation2] sm:$0xff]  ;;  %v27_v3 = vld [vmem:[#allocation2 + $0x10] sm:$0xff]  ;;  %s279_s0 = smov [#allocation5]   ;;  %s175_s16 = sshll.u32 %s319_s1, 4  ;;  %s176_s16 = int_to_ptr.hbm [resolvable:$true] %s175_s16 }
   0x8   :  { %192 = vmatpush.xpose.msk.msra.mxu1 %vm29_vm0, %v28_v1  ;;  %202 = vmatpush.xpose.msk.msra.mxu3 %vm29_vm0, %v28_v1  ;;  %s173_s13 = sshll.u32 %s279_s0, 4  ;;  %s174_s13 = int_to_ptr.vmem [resolvable:$true] %s173_s13 }
   0xb   :  { %189 = vmatpush.xpose.msk.msra.mxu0 %vm29_vm0, %v25_v2  ;;  %201 = vmatpush.xpose.msk.msra.mxu2 %vm29_vm0, %v25_v2 }
   0xc   :  { %193 = vmatpush.xpose.msk.msra.mxu1 %vm29_vm0, %v27_v3  ;;  %203 = vmatpush.xpose.msk.msra.mxu3 %vm29_vm0, %v27_v3 }
   0xe   :  { %190 = vmatmul.msk.f32.vlgmr.msra.gmra.mxu0 %vm29_vm0, %v25_v2  ;;  %191 = vmatmul.msk.f32.vlgmr.msra.gmra.mxu2 %vm29_vm0, %v26_v0 }
   0xf   :  { %194 = vmatmul.msk.f32.vlgmr.msra.gmra.mxu1 %vm29_vm0, %v27_v3  ;;  %195 = vmatmul.msk.f32.vlgmr.msra.gmra.mxu3 %vm29_vm0, %v28_v1 }
  0x8b   :  { %v53_v4 = vpop.f32.mrf.mxu0 }
  0x8c   :  { %v196_v5 = vmul.f32 -1.442695, %v53_v4  ;;  %v82_v6 = vpop.f32.mrf.mxu1 }
  0x8d   :  { %v198_v7 = vmul.f32 -1.442695, %v82_v6 }
  0x8e   :  { %208 = vpow2.f32 %v196_v5 }
  0x8f   :  { %210 = vpow2.f32 %v198_v7 }
  0x91   :  { %v56_v8 = vpop.f32.mrf.mxu2 }
  0x92   :  { %v197_v9 = vmul.f32 -1.442695, %v56_v8  ;;  %v85_v10 = vpop.f32.mrf.mxu3 }
  0x93   :  { %v199_v11 = vmul.f32 -1.442695, %v85_v10 }
  0x94   :  { %v209_v12 = vpop.eup %208  ;;  %212 = vpow2.f32 %v197_v9 }
  0x95   :  { %v211_v13 = vpop.eup %210  ;;  %v100_v14 = vadd.f32 1.0, %v209_v12  ;;  %214 = vpow2.f32 %v199_v11 }
  0x96   :  { %v102_v15 = vadd.f32 1.0, %v211_v13 }
  0x97   :  { %216 = vrcp.f32 %v100_v14  ;;  %v113_v25 = vand.u32 2147483647, %v100_v14  ;;  %v115_v26 = vand.u32 2147483648, %v100_v14  ;;  %vm109_vm1 = vweird.f32 %v100_v14 }
  0x98   :  { %218 = vrcp.f32 %v102_v15  ;;  %v143_v28 = vand.u32 2147483647, %v102_v15  ;;  %v145_v30 = vand.u32 2147483648, %v102_v15  ;;  %vm139_vm3 = vweird.f32 %v102_v15 }
  0x99   :  { %vm114_vm5 = vcmp.eq.f32.partialorder %v113_v25, 8.507059e+37  ;;  %v116_v36 = vor.u32 1.1754944e-38, %v115_v26 }
  0x9a   :  { %v213_v16 = vpop.eup %212  ;;  %vm144_vm8 = vcmp.eq.f32.partialorder %v143_v28, 8.507059e+37  ;;  %v146_v39 = vor.u32 1.1754944e-38, %v145_v30 }
  0x9b   :  { %v215_v17 = vpop.eup %214  ;;  %v101_v18 = vadd.f32 1.0, %v213_v16 }
  0x9c   :  { %v103_v19 = vadd.f32 1.0, %v215_v17 }
  0x9d   :  { %v217_v20 = vpop.eup %216  ;;  %220 = vrcp.f32 %v101_v18  ;;  %v128_v41 = vand.u32 2147483647, %v101_v18  ;;  %v130_v43 = vand.u32 2147483648, %v101_v18  ;;  %vm124_vm12 = vweird.f32 %v101_v18 }
  0x9e   :  { %v219_v21 = vpop.eup %218  ;;  %v105_v22 = vmul.f32 %v217_v20, %v100_v14  ;;  %222 = vrcp.f32 %v103_v19  ;;  %vm110_vm2 = vweird.f32 %v217_v20  ;;  %v160_v48 = vand.u32 2147483648, %v103_v19 }
  0x9f   :  { %v135_v23 = vmul.f32 %v219_v21, %v102_v15  ;;  %vm140_vm4 = vweird.f32 %v219_v21  ;;  %vm111_vm7 = vmor %vm109_vm1, %vm110_vm2  ;;  %v158_v51 = vand.u32 2147483647, %v103_v19  ;;  %v131_v53 = vor.u32 1.1754944e-38, %v130_v43 }
  0xa0   :  { %v106_v24 = vsub.f32 1.0, %v105_v22  ;;  %vm141_vm9 = vmor %vm139_vm3, %vm140_vm4  ;;  %vm154_vm14 = vweird.f32 %v103_v19  ;;  %vm129_vm15 = vcmp.eq.f32.partialorder %v128_v41, 8.507059e+37  ;;  %v161_v55 = vor.u32 1.1754944e-38, %v160_v48 }
  0xa1   :  { %v136_v27 = vsub.f32 1.0, %v135_v23  ;;  %vm159_vm1 = vcmp.eq.f32.partialorder %v158_v51, 8.507059e+37 }
  0xa2   :  { %v107_v29 = vmul.f32 %v217_v20, %v106_v24 }
  0xa3   :  { %v221_v31 = vpop.eup %220  ;;  %v137_v32 = vmul.f32 %v219_v21, %v136_v27 }
  0xa4   :  { %v223_v33 = vpop.eup %222  ;;  %v108_v34 = vadd.f32 %v217_v20, %v107_v29  ;;  %v120_v35 = vmul.f32 %v221_v31, %v101_v18  ;;  %vm125_vm10 = vweird.f32 %v221_v31 }
  0xa5   :  { %v138_v37 = vadd.f32 %v219_v21, %v137_v32  ;;  %v150_v38 = vmul.f32 %v223_v33, %v103_v19  ;;  %vm155_vm11 = vweird.f32 %v223_v33  ;;  %vm126_vm13 = vmor %vm124_vm12, %vm125_vm10 }
  0xa6   :  { %v121_v40 = vsub.f32 1.0, %v120_v35  ;;  %v112_v42 = vsel %vm111_vm7, %v217_v20, %v108_v34  ;;  %vm156_vm0 = vmor %vm154_vm14, %vm155_vm11 }
  0xa7   :  { %v151_v44 = vsub.f32 1.0, %v150_v38  ;;  %v117_v45 = vsel %vm114_vm5, %v116_v36, %v112_v42  ;;  %v142_v46 = vsel %vm141_vm9, %v219_v21, %v138_v37 }
  0xa8   :  { %v122_v47 = vmul.f32 %v221_v31, %v121_v40  ;;  %v147_v49 = vsel %vm144_vm8, %v146_v39, %v142_v46  ;;  %165 = vst.msk [vmem:[#allocation5] sm:$0xff] %vm164_vm6, %v117_v45 }
  0xa9   :  { %v152_v50 = vmul.f32 %v223_v33, %v151_v44  ;;  %167 = vst.msk [vmem:[#allocation5 + $0x10] sm:$0xff] %vm164_vm6, %v147_v49 }
  0xaa   :  { %v123_v52 = vadd.f32 %v221_v31, %v122_v47 }
  0xab   :  { %v153_v54 = vadd.f32 %v223_v33, %v152_v50 }
  0xac   :  { %v127_v56 = vsel %vm126_vm13, %v221_v31, %v123_v52 }
  0xad   :  { %v132_v57 = vsel %vm129_vm15, %v131_v53, %v127_v56  ;;  %v157_v58 = vsel %vm156_vm0, %v223_v33, %v153_v54 }
  0xae   :  { %v162_v59 = vsel %vm159_vm1, %v161_v55, %v157_v58  ;;  %166 = vst.msk [vmem:[#allocation5 + $0x8] sm:$0xff] %vm164_vm6, %v132_v57 }
  0xaf   :  { %168 = vst.msk [vmem:[#allocation5 + $0x18] sm:$0xff] %vm164_vm6, %v162_v59 }
  0xb0   :  { %181 = dma.vmem_to_hbm [thread:$0]  %s174_s13, 512, %s176_s16, [#allocation4], %s277_s11, %s277_s11, %s278_s12  }
  0xb1   :  { %274 = dma.done.wait [#allocation4], 512  }
  0xb2   :  { %275 = vsyncadd [#allocation4], 4294966784 }
  0xb3   :  { %186 = vsyncpa [#allocation3], 1 }
  0xb4   :  { %187 = vsyncpa [#allocation4], 1 }

</bundles_post_ra>
